<compile_context>
chip_gen: v7x
topology: tpu7x:2x2x1
jax: 0.10.0
libtpu: 0.0.40
codegen_flags: <defaults>
</compile_context>

<pallas_src>
import functools

import jax
import jax.numpy as jnp
from jax.experimental import pallas as pl
from jax.experimental.pallas import tpu as pltpu


def _vmem_capacity_bytes():
    """Physical VMEM per TensorCore (64 MiB on v7x, 128 MiB on v5e/v6e)."""
    try:
        return int(pltpu.get_tpu_info().vmem_capacity_bytes)
    except Exception:
        return 64 * 1024 * 1024  # conservative (v7x-sized) fallback


def _focal_loss_kernel(logits_ref, targets_ref, alpha_ref, out_ref, *,
                       gamma, n_rows, n_classes, tile_n, per_sample):
    x = logits_ref[...].astype(jnp.float32)              # (tile_n, C)
    t = targets_ref[...]                                  # (tile_n, 1) int32
    a = alpha_ref[...].astype(jnp.float32)                # (1, C)

    # Row validity: masks (a) the ragged final tile (no wrapper padding, so
    # the tail rows of the last block are stale VMEM garbage) and (b)
    # out-of-range / ignore-style targets, which contribute 0 loss.
    row0 = pl.program_id(0) * tile_n
    row_ids = row0 + jax.lax.broadcasted_iota(jnp.int32, (tile_n, 1), 0)
    valid = (row_ids < n_rows) & (t >= 0) & (t < n_classes)

    # Numerically stable logsumexp along the class (lane) axis.  C is the
    # full, unpadded class dim; Mosaic masks the physical lane padding.
    m = jnp.max(x, axis=-1, keepdims=True)                # (tile_n, 1)
    shifted = x - m
    lse = jnp.log(jnp.sum(jnp.exp(shifted), axis=-1, keepdims=True))

    # One-hot gather of shifted[target] and alpha[target] via iota compare
    # (no dynamic gather); alpha_t comes for free off the same mask.
    class_ids = jax.lax.broadcasted_iota(jnp.int32, x.shape, 1)
    onehot = class_ids == t                                # (tile_n, C)
    x_t = jnp.sum(jnp.where(onehot, shifted, 0.0), axis=-1, keepdims=True)
    alpha_t = jnp.sum(jnp.where(onehot, a, 0.0), axis=-1, keepdims=True)

    # Cross-entropy; clamp >= 0 so pt = exp(-ce) <= 1 (focal term stays sane).
    ce = jnp.maximum(lse - x_t, 0.0)                       # (tile_n, 1)
    pt = jnp.exp(-ce)
    omp = jnp.maximum(1.0 - pt, 0.0)

    g = float(gamma)
    if g == 0.0:
        focal = jnp.ones_like(omp)
    elif g.is_integer() and g > 0:
        focal = omp
        for _ in range(int(g) - 1):                        # gamma=2 -> one VPU mul
            focal = focal * omp
    else:
        focal = jnp.where(omp > 0.0, omp ** g, 0.0)        # guard pow(0, g)

    loss = jnp.where(valid, alpha_t * focal * ce, 0.0)     # (tile_n, 1)

    if per_sample:
        out_ref[...] = loss                                # (tile_n, 1) block
    else:
        # Per-tile partial sum: skips the per-sample (lane-narrow) HBM
        # writeback entirely for the default 'mean'/'sum' reductions.
        out_ref[...] = jnp.sum(loss, axis=0, keepdims=True).reshape(1, 1, 1)


def focal_loss_multiclass(logits, targets, alpha=None, gamma=2.0,
                          reduction="mean", tile_rows=None):
    """Pallas TPU implementation of FocalLossMultiClass.forward.

    logits:  (N, C) float (f32 or bf16)
    targets: (N,)   int class indices
    alpha:   optional (C,) per-class weights
    reduction: 'mean' | 'sum' | 'none'
    tile_rows: optional override of the N-tile size (testing / tuning)
    """
    N, C = logits.shape

    targets_2d = targets.astype(jnp.int32).reshape(N, 1)
    if alpha is not None:
        alpha_row = jnp.asarray(alpha, dtype=jnp.float32).reshape(1, C)
    else:
        alpha_row = jnp.ones((1, C), dtype=jnp.float32)

    # ---- Tile sizing.  No wrapper-side padding: the class dim is carried at
    # full extent and the ragged final N-tile is masked in-kernel.  Budget the
    # tile against physical VMEM so v7x (64 MiB) compiles while v5e/v6e
    # (128 MiB) get larger tiles that amortize the ~0.35 us per-step overhead.
    c_phys = pl.cdiv(C, 128) * 128           # physical lane width of one row
    itemsize = jnp.dtype(logits.dtype).itemsize
    in_row = c_phys * itemsize
    f32_row = c_phys * 4
    # Per-row VMEM: 2x double-buffered input tile + ~3 full-tile f32 temps
    # (upcast/shifted/exp) + a few (tile_n, 1) column temps (lane-padded).
    per_row_vmem = 2 * in_row + 3 * f32_row + 4 * 128 * 4

    vmem_cap = _vmem_capacity_bytes()
    tile_budget = (24 if vmem_cap <= 64 * 1024 * 1024 else 48) * 1024 * 1024

    if tile_rows is not None:
        tile_n = max(8, int(tile_rows))
    else:
        tile_n = (tile_budget // per_row_vmem) // 8 * 8
        tile_n = max(8, min(tile_n, 8192))
    if N >= 8:
        tile_n = max(8, min(tile_n // 8 * 8, (N // 8) * 8))
    else:
        tile_n = N                            # block dim == full dim is legal
    num_tiles = pl.cdiv(N, tile_n)

    vmem_limit = int(min((vmem_cap * 3) // 4,
                         max(32 * 1024 * 1024,
                             tile_n * per_row_vmem + 2 * 1024 * 1024)))

    per_sample = reduction not in ("mean", "sum")
    kernel = functools.partial(
        _focal_loss_kernel, gamma=float(gamma), n_rows=N, n_classes=C,
        tile_n=tile_n, per_sample=per_sample)

    in_specs = [
        pl.BlockSpec((tile_n, C), lambda i: (i, 0)),   # logits (full, unpadded C)
        pl.BlockSpec((tile_n, 1), lambda i: (i, 0)),   # targets
        pl.BlockSpec((1, C), lambda i: (0, 0)),        # per-class alpha (resident)
    ]
    if per_sample:
        out_shape = jax.ShapeDtypeStruct((N, 1), jnp.float32)
        out_specs = pl.BlockSpec((tile_n, 1), lambda i: (i, 0))
    else:
        out_shape = jax.ShapeDtypeStruct((num_tiles, 1, 1), jnp.float32)
        out_specs = pl.BlockSpec((1, 1, 1), lambda i: (i, 0, 0))

    out = pl.pallas_call(
        kernel,
        out_shape=out_shape,
        grid_spec=pltpu.PrefetchScalarGridSpec(
            num_scalar_prefetch=0,
            grid=(num_tiles,),
            in_specs=in_specs,
            out_specs=out_specs,
        ),
        compiler_params=pltpu.CompilerParams(
            # Each tile writes a distinct output block, so the N axis is fully
            # parallel; on v7x the pipeline can shard it across both TCs.
            dimension_semantics=("parallel",),
            vmem_limit_bytes=vmem_limit,
        ),
    )(logits, targets_2d, alpha_row)

    if reduction == "mean":
        return jnp.sum(out) / jnp.float32(N)
    elif reduction == "sum":
        return jnp.sum(out)
    else:  # 'none'
        return out[:, 0]


def _focal_loss_ref(logits, targets, alpha, gamma, reduction="mean"):
    # Pure-JAX reference for sanity checking.
    logp = jax.nn.log_softmax(logits.astype(jnp.float32), axis=-1)
    ce = -jnp.take_along_axis(logp, targets[:, None], axis=-1)[:, 0]
    pt = jnp.exp(-ce)
    alpha_t = alpha[targets] if alpha is not None else 1.0
    f_loss = alpha_t * (1.0 - pt) ** gamma * ce
    if reduction == "mean":
        return jnp.mean(f_loss)
    elif reduction == "sum":
        return jnp.sum(f_loss)
    return f_loss


if __name__ == "__main__":
    key = jax.random.PRNGKey(0)
    k1, k2, k3, k4 = jax.random.split(key, 4)

    # Primary small config (aligned shapes), module-default reduction.
    N, C = 8, 32
    logits = jax.random.normal(k1, (N, C), dtype=jnp.float32)
    targets = jax.random.randint(k2, (N,), 0, C, dtype=jnp.int32)
    alpha = 0.25 + 0.5 * (jnp.arange(C, dtype=jnp.float32) / C)

    loss = focal_loss_multiclass(logits, targets, alpha=alpha, gamma=2.0,
                                 reduction="mean")
    loss = jax.block_until_ready(loss)
    ref = _focal_loss_ref(logits, targets, alpha, 2.0, "mean")
    assert jnp.allclose(loss, ref, rtol=1e-5, atol=1e-6), (loss, ref)

    # sum / none reductions and the no-alpha path on the same inputs.
    for red in ("sum", "none"):
        got = jax.block_until_ready(
            focal_loss_multiclass(logits, targets, alpha=alpha, gamma=2.0,
                                  reduction=red))
        want = _focal_loss_ref(logits, targets, alpha, 2.0, red)
        assert jnp.allclose(got, want, rtol=1e-5, atol=1e-5), (red, got, want)
    got = jax.block_until_ready(
        focal_loss_multiclass(logits, targets, alpha=None, gamma=2.0,
                              reduction="mean"))
    want = _focal_loss_ref(logits, targets, None, 2.0, "mean")
    assert jnp.allclose(got, want, rtol=1e-5, atol=1e-6), (got, want)

    # Ragged shapes (C not a lane multiple, N not a sublane multiple):
    # exercises the no-padding path with in-kernel masking.
    N2, C2 = 10, 37
    logits2 = jax.random.normal(k3, (N2, C2), dtype=jnp.float32)
    targets2 = jax.random.randint(k4, (N2,), 0, C2, dtype=jnp.int32)
    alpha2 = 0.1 + 0.9 * (jnp.arange(C2, dtype=jnp.float32) / C2)
    for red in ("mean", "sum", "none"):
        got = jax.block_until_ready(
            focal_loss_multiclass(logits2, targets2, alpha=alpha2, gamma=2.0,
                                  reduction=red))
        want = _focal_loss_ref(logits2, targets2, alpha2, 2.0, red)
        assert jnp.allclose(got, want, rtol=1e-5, atol=1e-5), (red, got, want)

    # Multi-tile grid (forced small tile) + non-integer gamma (pow path).
    N3, C3 = 40, 32
    logits3 = jax.random.normal(k1, (N3, C3), dtype=jnp.float32)
    targets3 = jax.random.randint(k2, (N3,), 0, C3, dtype=jnp.int32)
    got = jax.block_until_ready(
        focal_loss_multiclass(logits3, targets3, alpha=None, gamma=1.5,
                              reduction="mean", tile_rows=16))
    want = _focal_loss_ref(logits3, targets3, None, 1.5, "mean")
    assert jnp.allclose(got, want, rtol=1e-5, atol=1e-6), (got, want)

    print("KERNEL_OK")
</pallas_src>

<mosaic_0001>
module attributes {stable_mosaic.version = 11 : i64} {
  func.func @_focal_loss_kernel(%arg0: i32, %arg1: memref<8x32xf32, #tpu.memory_space<vmem>>, %arg2: memref<8x1xi32, #tpu.memory_space<vmem>>, %arg3: memref<1x32xf32, #tpu.memory_space<vmem>>, %arg4: memref<1x1x1xf32, #tpu.memory_space<vmem>>) attributes {dimension_semantics = [#tpu.dimension_semantics<parallel>], iteration_bounds = array<i64: 1>, scalar_prefetch = 0 : i64, scratch_operands = 0 : i64, tpu.core_type = #tpu.core_type<tc>, window_params = [{transform_indices = @transform_0, window_bounds = array<i64: 8, 32>}, {transform_indices = @transform_1, window_bounds = array<i64: 8, 1>}, {pipeline_mode = #tpu.pipeline_mode<synchronous>, transform_indices = @transform_2, window_bounds = array<i64: 1, 32>}, {transform_indices = @transform_3, window_bounds = array<i64: 1, 1, 1>}]} {
    %c0 = arith.constant 0 : index
    %c0_0 = arith.constant 0 : index
    %0 = vector.load %arg1[%c0, %c0_0] : memref<8x32xf32, #tpu.memory_space<vmem>>, vector<8x32xf32>
    %c0_1 = arith.constant 0 : index
    %c0_2 = arith.constant 0 : index
    %1 = vector.load %arg2[%c0_1, %c0_2] : memref<8x1xi32, #tpu.memory_space<vmem>>, vector<8x1xi32>
    %c0_3 = arith.constant 0 : index
    %c0_4 = arith.constant 0 : index
    %2 = vector.load %arg3[%c0_3, %c0_4] : memref<1x32xf32, #tpu.memory_space<vmem>>, vector<1x32xf32>
    %c8_i32 = arith.constant 8 : i32
    %3 = arith.muli %arg0, %c8_i32 : i32
    %4 = tpu.iota {dimensions = array<i32: 0>} : vector<8x1xi32>
    %5 = vector.broadcast %3 : i32 to vector<8x1xi32>
    %6 = arith.addi %5, %4 : vector<8x1xi32>
    %c8_i32_5 = arith.constant 8 : i32
    %7 = vector.broadcast %c8_i32_5 : i32 to vector<8x1xi32>
    %8 = arith.cmpi slt, %6, %7 : vector<8x1xi32>
    %c0_i32 = arith.constant 0 : i32
    %9 = vector.broadcast %c0_i32 : i32 to vector<8x1xi32>
    %10 = arith.cmpi sge, %1, %9 : vector<8x1xi32>
    %11 = arith.andi %8, %10 : vector<8x1xi1>
    %c32_i32 = arith.constant 32 : i32
    %12 = vector.broadcast %c32_i32 : i32 to vector<8x1xi32>
    %13 = arith.cmpi slt, %1, %12 : vector<8x1xi32>
    %14 = arith.andi %11, %13 : vector<8x1xi1>
    %cst = arith.constant dense<0xFF800000> : vector<8xf32>
    %15 = vector.multi_reduction <maximumf>, %0, %cst [1] : vector<8x32xf32> to vector<8xf32>
    %16 = vector.shape_cast %15 : vector<8xf32> to vector<8x1xf32>
    %17 = vector.broadcast %16 : vector<8x1xf32> to vector<8x32xf32>
    %18 = arith.subf %0, %17 : vector<8x32xf32>
    %19 = math.exp %18 : vector<8x32xf32>
    %cst_6 = arith.constant dense<0.000000e+00> : vector<8xf32>
    %20 = vector.multi_reduction <add>, %19, %cst_6 [1] : vector<8x32xf32> to vector<8xf32>
    %21 = vector.shape_cast %20 : vector<8xf32> to vector<8x1xf32>
    %22 = math.log %21 : vector<8x1xf32>
    %23 = tpu.iota {dimensions = array<i32: 1>} : vector<8x32xi32>
    %24 = vector.broadcast %1 : vector<8x1xi32> to vector<8x32xi32>
    %25 = arith.cmpi eq, %23, %24 : vector<8x32xi32>
    %cst_7 = arith.constant 0.000000e+00 : f32
    %26 = vector.broadcast %cst_7 : f32 to vector<8x32xf32>
    %27 = arith.select %25, %18, %26 : vector<8x32xi1>, vector<8x32xf32>
    %cst_8 = arith.constant dense<0.000000e+00> : vector<8xf32>
    %28 = vector.multi_reduction <add>, %27, %cst_8 [1] : vector<8x32xf32> to vector<8xf32>
    %29 = vector.shape_cast %28 : vector<8xf32> to vector<8x1xf32>
    %cst_9 = arith.constant 0.000000e+00 : f32
    %30 = vector.shape_cast %2 : vector<1x32xf32> to vector<1x32xf32>
    %31 = vector.broadcast %30 : vector<1x32xf32> to vector<8x32xf32>
    %32 = vector.broadcast %cst_9 : f32 to vector<8x32xf32>
    %33 = arith.select %25, %31, %32 : vector<8x32xi1>, vector<8x32xf32>
    %cst_10 = arith.constant dense<0.000000e+00> : vector<8xf32>
    %34 = vector.multi_reduction <add>, %33, %cst_10 [1] : vector<8x32xf32> to vector<8xf32>
    %35 = vector.shape_cast %34 : vector<8xf32> to vector<8x1xf32>
    %36 = arith.subf %22, %29 : vector<8x1xf32>
    %cst_11 = arith.constant 0.000000e+00 : f32
    %37 = vector.broadcast %cst_11 : f32 to vector<8x1xf32>
    %38 = arith.maximumf %36, %37 : vector<8x1xf32>
    %cst_12 = arith.constant 0.000000e+00 : f32
    %39 = vector.broadcast %cst_12 : f32 to vector<8x1xf32>
    %40 = arith.subf %39, %38 : vector<8x1xf32>
    %41 = math.exp %40 : vector<8x1xf32>
    %cst_13 = arith.constant 1.000000e+00 : f32
    %42 = vector.broadcast %cst_13 : f32 to vector<8x1xf32>
    %43 = arith.subf %42, %41 : vector<8x1xf32>
    %cst_14 = arith.constant 0.000000e+00 : f32
    %44 = vector.broadcast %cst_14 : f32 to vector<8x1xf32>
    %45 = arith.maximumf %43, %44 : vector<8x1xf32>
    %46 = arith.mulf %45, %45 : vector<8x1xf32>
    %47 = arith.mulf %35, %46 : vector<8x1xf32>
    %48 = arith.mulf %47, %38 : vector<8x1xf32>
    %cst_15 = arith.constant 0.000000e+00 : f32
    %49 = vector.broadcast %cst_15 : f32 to vector<8x1xf32>
    %50 = arith.select %14, %48, %49 : vector<8x1xi1>, vector<8x1xf32>
    %cst_16 = arith.constant dense<0.000000e+00> : vector<1xf32>
    %51 = vector.multi_reduction <add>, %50, %cst_16 [0] : vector<8x1xf32> to vector<1xf32>
    %52 = vector.shape_cast %51 : vector<1xf32> to vector<1x1xf32>
    %53 = vector.shape_cast %52 : vector<1x1xf32> to vector<1x1x1xf32>
    %c0_17 = arith.constant 0 : index
    %c0_18 = arith.constant 0 : index
    %c0_19 = arith.constant 0 : index
    %54 = vector.load %arg4[%c0_17, %c0_18, %c0_19] : memref<1x1x1xf32, #tpu.memory_space<vmem>>, vector<1x1x1xf32>
    tpu.vector_store %arg4[%c0_17, %c0_18, %c0_19], %53 {strides = array<i32>} : memref<1x1x1xf32, #tpu.memory_space<vmem>>, vector<1x1x1xf32>,
    return
  }
  func.func @transform_0(%arg0: i32) -> (i32, i32) {
    %c0_i32 = arith.constant 0 : i32
    %c0_i32_0 = arith.constant 0 : i32
    return %arg0, %c0_i32 : i32, i32
  }
  func.func @transform_1(%arg0: i32) -> (i32, i32) {
    %c0_i32 = arith.constant 0 : i32
    %c0_i32_0 = arith.constant 0 : i32
    return %arg0, %c0_i32 : i32, i32
  }
  func.func @transform_2(%arg0: i32) -> (i32, i32) {
    %c0_i32 = arith.constant 0 : i32
    %c0_i32_0 = arith.constant 0 : i32
    %c0_i32_1 = arith.constant 0 : i32
    return %c0_i32, %c0_i32_0 : i32, i32
  }
  func.func @transform_3(%arg0: i32) -> (i32, i32, i32) {
    %c0_i32 = arith.constant 0 : i32
    %c0_i32_0 = arith.constant 0 : i32
    %c0_i32_1 = arith.constant 0 : i32
    return %arg0, %c0_i32, %c0_i32_0 : i32, i32, i32
  }
}

</mosaic_0001>

<bundles_post_ra>
// kernel: tpu_custom_call.1
= control target key start
LH: loop header
LB: loop body
LE: loop exit
PB: predicated region body
PF: predicated region fallthrough
CT: control target
= control target key end

     0   :  { %vm28_vm0 = vcmask 261120   ;;  %s176_s0 = inlined_call_operand.vmem [shape: f32[8,32], index: 0, kind: input, shape index: {}]   ;;  %s177_s1 = inlined_call_operand.vmem [shape: s32[8,1], index: 1, kind: input, shape index: {}]   ;;  %s178_s2 = inlined_call_operand.vmem [shape: f32[1,32], index: 2, kind: input, shape index: {}]   ;;  %s179_s3 = inlined_call_operand.hbm [shape: f32[1,1,1], index: 3, kind: output, shape index: {}]  }
   0x1   :  { %v15_v0 = vld [vmem:[%s176_s0] sm:$0xff] }
   0x2   :  { %8 = vsyncpa [#allocation3], 0  ;;  %v29_v1 = vsel %vm28_vm0, %v15_v0, -inf  ;;  %v129_v2 = vmov 0   ;;  %v16_v3 = vld [vmem:[%s177_s1] sm:$0xff]  ;;  %v40_v7 = vlaneseq  ;;  %vm71_vm5 = vcmask 7168  }
   0x3   :  { %98 = vset.pattern.permute.xlu0 %v129_v2  ;;  %v95_v12 = vld [vmem:[%s178_s2] ss:$0 sm:$0xff]  ;;  %vm24_vm2 = vcmp.ge.s32.totalorder %v16_v3, 0  ;;  %vm26_vm3 = vcmp.lt.s32.totalorder %v16_v3, 32  ;;  %s130_s1 = smov [#allocation2]   ;;  %vm79_vm6 = vcmask 0  }
   0x4   :  { %30 = vmax.xlane.f32.xlu0 %v29_v1  ;;  %v41_v8 = vand.u32 127, %v40_v7  ;;  %vm27_vm4 = vmand %vm24_vm2, %vm26_vm3  ;;  %s87_s2 = sshll.u32 %s130_s1, 4  ;;  %s88_s2 = int_to_ptr.vmem [resolvable:$true] %s87_s2 }
   0x5   :  { %s105_s17 = scalar_lea.vmem %s88_s2, 16  ;;  %s109_s18 = scalar_lea.vmem %s88_s2, 32 }
   0x6   :  { %p106_p0 = scmp.ne.s32.totalorder %s88_s2, %s105_s17  ;;  %p110_p1 = scmp.lt.s32.totalorder %s88_s2, %s88_s2 }
   0x7   :  { %p111_p2 = scmp.lt.s32.totalorder %s109_s18, %s105_s17 }
   0x9   :  { %p112_p3 = por %p111_p2, %p110_p1 }
   0xb   :  { %p113_p4 = pnand %p112_p3, %p106_p0 }
  0x1a   :  { %43 = vperm.xlu0 %98, %v16_v3  }
  0x91   :  { %v31_v4 = vpop.xlane.xlu0 %30 }
  0x92   :  { %v32_v5 = vsub.f32 %v15_v0, %v31_v4 }
  0x94   :  { %v33_v6 = vmul.f32 1.442695, %v32_v5 }
  0x96   :  { %99 = vpow2.f32 %v33_v6 }
  0x99   :  { %v44_v9 = vpop.permute.xlu0 %43 }
  0x9a   :  { %vm45_vm1 = vcmp.eq.s32.totalorder %v41_v8, %v44_v9 }
  0x9b   :  { %v46_v13 = vsel %vm45_vm1, %v32_v5, 0.0  ;;  %v56_v14 = vsel %vm45_vm1, %v95_v12, 0.0 }
  0x9c   :  { %v47_v15 = vsel %vm28_vm0, %v46_v13, 0.0  ;;  %v57_v16 = vsel %vm28_vm0, %v56_v14, 0.0 }
  0xa0   :  { %v100_v10 = vpop.eup %99 }
  0xa1   :  { %v35_v11 = vsel %vm28_vm0, %v100_v10, 0.0 }
  0xa2   :  { %36 = vadd.xlane.f32.xlu1 %v35_v11 }
  0xa6   :  { %48 = vadd.xlane.f32.xlu1 %v47_v15 }
  0xaa   :  { %58 = vadd.xlane.f32.xlu1 %v57_v16 }
 0x12f   :  { %v37_v17 = vpop.xlane.xlu1 %36 }
 0x130   :  { %101 = vlog2.f32 %v37_v17 }
 0x133   :  { %v49_v20 = vpop.xlane.xlu1 %48 }
 0x137   :  { %v59_v29 = vpop.xlane.xlu1 %58 }
 0x13a   :  { %v102_v18 = vpop.eup %101 }
 0x13b   :  { %v39_v19 = vmul.f32 0.6931472, %v102_v18 }
 0x13d   :  { %v60_v21 = vsub.f32 %v39_v19, %v49_v20 }
 0x13f   :  { %v61_v22 = vmax.f32 %v60_v21, 0.0 }
 0x141   :  { %v62_v23 = vsub.f32 0.0, %v61_v22 }
 0x143   :  { %v63_v24 = vmul.f32 1.442695, %v62_v23 }
 0x145   :  { %103 = vpow2.f32 %v63_v24 }
 0x14f   :  { %v104_v25 = vpop.eup %103 }
 0x150   :  { %v65_v26 = vsub.f32 1.0, %v104_v25 }
 0x152   :  { %v66_v27 = vmax.f32 %v65_v26, 0.0 }
 0x154   :  { %v67_v28 = vmul.f32 %v66_v27, %v66_v27 }
 0x156   :  { %v68_v30 = vmul.f32 %v67_v28, %v59_v29 }
 0x158   :  { %v69_v31 = vmul.f32 %v68_v30, %v61_v22 }
 0x15a   :  { %v70_v32 = vsel %vm27_vm4, %v69_v31, 0.0 }
 0x15b   :  { %v72_v33 = vsel %vm71_vm5, %v70_v32, 0.0 }
 0x15c   :  { %v73_v34 = vrot.slane %v72_v33, 4 }
 0x15e   :  { %v74_v35 = vadd.f32 %v73_v34, %v72_v33 }
 0x160   :  { %v75_v36 = vrot.slane %v74_v35, 2 }
 0x162   :  { %v76_v37 = vadd.f32 %v75_v36, %v74_v35 }
 0x164   :  { %v77_v38 = vrot.slane %v76_v37, 1 }
 0x166   :  { %v78_v39 = vadd.f32 %v77_v38, %v76_v37 }
 0x168   :  { %80 = vst.msk [vmem:[#allocation2] sm:$0x1] %vm79_vm6, %v78_v39 }
 0x169   :  { %116 = shalt.err (!%p113_p4)
}
 0x16a   :  { %s117_s21 = scalar_lea.hbm %s179_s3, 16 }
 0x16b   :  { %p118_p5 = scmp.ne.s32.totalorder %s179_s3, %s117_s21  ;;  %p121_p6 = scmp.lt.u32.totalorder %s117_s21, %s179_s3 }
 0x16d   :  { %p123_p7 = pnand %p121_p6, %p118_p5 }
 0x16f   :  { %126 = shalt.err (!%p123_p7)
}
 0x170   :  { %90 = dma.vmem_to_hbm [thread:$0]  %s88_s2, 16, %s179_s3, [#allocation3]  }
 0x171   :  { %127 = dma.done.wait [#allocation3], 16  }
 0x172   :  { %128 = vsyncadd [#allocation3], 4294967280 }
 0x173   :  { %94 = vsyncpa [#allocation3], 1 }

</bundles_post_ra>
